<compile_context>
chip_gen: v6e
topology: v6e:2x2x1
jax: 0.10.0
libtpu: 0.0.40
codegen_flags: <defaults>
</compile_context>

<pallas_src>
import functools

import jax
import jax.numpy as jnp
from jax import lax
from jax.experimental import pallas as pl
from jax.experimental.pallas import tpu as pltpu

EPS = 1e-5
SUBLANE = 8


def _round_up(x, m):
    return (x + m - 1) // m * m


def _im2col_rows(x_cm, masks, width):
    """Build the (9*Cpad, M) im2col matrix for a 3x3 / stride-1 / pad-1 conv.

    x_cm  : (Cpad, M) activations, m flattened in (n, h, w) order, Cpad % 8 == 0.
    masks : (9, M) f32 boundary masks, row kh*3+kw (center row is all-ones, unused).
    Lane shifts are single XLU rolls; wrapped lanes are zeroed by the masks. Row order is
    (kh, kw, ci) to match weights packed as transpose(w_oihw, (0,2,3,1)).reshape(Cout, 9*Cin).
    """
    m = x_cm.shape[1]
    pieces = []
    for kh in range(3):
        for kw in range(3):
            dh, dw = kh - 1, kw - 1
            s = dh * width + dw
            if s == 0:
                pieces.append(x_cm)
            else:
                idx = kh * 3 + kw
                shifted = pltpu.roll(x_cm, shift=(-s) % m, axis=1)
                pieces.append(shifted * masks[idx:idx + 1, :])
    # Each piece is whole (8,128) tiles (Cpad % 8 == 0, M % 128 == 0) -> pure tile stacking.
    return jnp.concatenate(pieces, axis=0)


def _bn_scale_shift(z_cm, gamma, beta, n_pix):
    """Training-mode BatchNorm folded into a per-channel scale/shift (single-pass stats)."""
    inv_n = 1.0 / n_pix
    mean = jnp.sum(z_cm, axis=1, keepdims=True) * inv_n
    mean_sq = jnp.sum(z_cm * z_cm, axis=1, keepdims=True) * inv_n
    var = jnp.maximum(mean_sq - mean * mean, 0.0)   # clamp single-pass cancellation
    scale = gamma * lax.rsqrt(var + EPS)
    shift = beta - mean * scale
    return scale, shift


def _standard_block_kernel(x_ref, masks_ref, w1_ref, w2_ref,
                           g1_ref, b1_ref, g2_ref, b2_ref, out_ref, *, width):
    """x: (Cpad, M); masks: (9, M) f32; w*: (Cpad, 9*Cpad); g*/b*: (Cpad, 1); out: (Cpad, M)."""
    _, n_pix = x_ref.shape
    x = x_ref[...]
    masks = masks_ref[...]          # read once; reused by both convs

    # conv_1: all 9 taps folded into K -> a single MXU matmul (K = 9*Cpad).
    p1 = _im2col_rows(x, masks, width)                                   # (9*Cpad, M)
    z1 = jnp.dot(w1_ref[...], p1, preferred_element_type=jnp.float32)    # (Cpad, M)

    # norm_1 (batch stats) + ReLU as one fused scale/shift pass.
    sc1, sh1 = _bn_scale_shift(z1, g1_ref[...], b1_ref[...], n_pix)
    y1 = jnp.maximum(z1 * sc1 + sh1, 0.0)

    # conv_2: same folded-K single matmul.
    p2 = _im2col_rows(y1, masks, width)                                  # (9*Cpad, M)
    z2 = jnp.dot(w2_ref[...], p2, preferred_element_type=jnp.float32)

    # norm_2 + residual add + ReLU (residual is the unsliced x input; padded rows are zero).
    sc2, sh2 = _bn_scale_shift(z2, g2_ref[...], b2_ref[...], n_pix)
    out_ref[...] = jnp.maximum(z2 * sc2 + sh2 + x, 0.0).astype(out_ref.dtype)


@jax.jit
def standard_block_pallas(x_nchw, w1_oihw, w2_oihw, g1, b1, g2, b2):
    """NCHW in / NCHW out, matching the PyTorch StandardBlock.forward interface."""
    n, cin, height, width = x_nchw.shape
    cmid = w1_oihw.shape[0]
    assert cin == cmid, "shortcut=None requires input_dim == hidden_dim"
    m = n * height * width
    cpad = _round_up(cin, SUBLANE)

    # Layout glue (plain JAX): channels-major, lane-dense flattened pixels, channels padded to
    # a sublane multiple so in-kernel im2col pieces are whole (8,128) tiles.
    x_cm = jnp.transpose(x_nchw, (1, 0, 2, 3)).reshape(cin, m).astype(jnp.float32)
    x_cm = jnp.pad(x_cm, ((0, cpad - cin), (0, 0)))

    def pack_w(w_oihw):
        # (Cout, Cin, 3, 3) -> (Cpad, 9*Cpad), K ordered (kh, kw, ci) to match im2col rows.
        w = jnp.transpose(w_oihw, (0, 2, 3, 1)).astype(jnp.float32)      # (Cout, 3, 3, Cin)
        w = jnp.pad(w, ((0, cpad - w.shape[0]), (0, 0), (0, 0), (0, cpad - w.shape[3])))
        return w.reshape(cpad, 9 * cpad)

    def pack_affine(v, fill):
        v = v.reshape(-1, 1).astype(jnp.float32)
        return jnp.pad(v, ((0, cpad - v.shape[0]), (0, 0)), constant_values=fill)

    # Boundary masks, built once in the wrapper (tiny f32 (9, M)); also zero the lanes that the
    # in-kernel rolls wrap around (every wrapped lane has h+dh or w+dw out of range).
    pos = jnp.arange(m, dtype=jnp.int32)
    h_idx = (pos // width) % height
    w_idx = pos % width
    rows = []
    for kh in range(3):
        for kw in range(3):
            dh, dw = kh - 1, kw - 1
            valid = ((h_idx + dh >= 0) & (h_idx + dh < height)
                     & (w_idx + dw >= 0) & (w_idx + dw < width))
            rows.append(valid.astype(jnp.float32))
    masks = jnp.stack(rows, axis=0)                                       # (9, M)

    # VMEM budget from actual residency (x, masks, p1/p2, z1/y1/z2, out, weights) + slack.
    est_bytes = 4 * ((5 * cpad + 2 * 9 * cpad + 16) * m + 2 * cpad * 9 * cpad)
    vmem_limit = int(min(max(8 * est_bytes, 16 << 20), 32 << 20))

    vmem = pl.BlockSpec(memory_space=pltpu.MemorySpace.VMEM)
    out_cm = pl.pallas_call(
        functools.partial(_standard_block_kernel, width=width),
        out_shape=jax.ShapeDtypeStruct((cpad, m), jnp.float32),
        in_specs=[vmem] * 8,
        out_specs=vmem,
        compiler_params=pltpu.CompilerParams(vmem_limit_bytes=vmem_limit),
    )(x_cm, masks, pack_w(w1_oihw), pack_w(w2_oihw),
      pack_affine(g1, 1.0), pack_affine(b1, 0.0),
      pack_affine(g2, 1.0), pack_affine(b2, 0.0))

    out = out_cm[:cmid].reshape(cmid, n, height, width)
    return jnp.transpose(out, (1, 0, 2, 3))


# ------------------------------- pure-JAX reference (for verification) --------------------------
def standard_block_ref(x_nchw, w1_oihw, w2_oihw, g1, b1, g2, b2):
    def conv(x, w):
        return lax.conv_general_dilated(x, w, window_strides=(1, 1),
                                        padding=((1, 1), (1, 1)),
                                        dimension_numbers=("NCHW", "OIHW", "NCHW"))

    def bn(x, g, b):
        mean = jnp.mean(x, axis=(0, 2, 3), keepdims=True)
        var = jnp.mean((x - mean) ** 2, axis=(0, 2, 3), keepdims=True)
        return ((x - mean) * lax.rsqrt(var + EPS) * g.reshape(1, -1, 1, 1)
                + b.reshape(1, -1, 1, 1))

    y = jax.nn.relu(bn(conv(x_nchw, w1_oihw), g1, b1))
    y = bn(conv(y, w2_oihw), g2, b2)
    return jax.nn.relu(y + x_nchw)


if __name__ == "__main__":
    N, C, H, W = 2, 4, 16, 16          # input_dim = hidden_dim = 4
    key = jax.random.PRNGKey(0)
    kx, k1, k2, kg1, kb1, kg2, kb2 = jax.random.split(key, 7)

    x = jax.random.normal(kx, (N, C, H, W), jnp.float32)
    w1 = 0.1 * jax.random.normal(k1, (C, C, 3, 3), jnp.float32)   # conv_1 weight (OIHW)
    w2 = 0.1 * jax.random.normal(k2, (C, C, 3, 3), jnp.float32)   # conv_2 weight (OIHW)
    g1 = 1.0 + 0.1 * jax.random.normal(kg1, (C,), jnp.float32)    # norm_1 gamma
    b1 = 0.1 * jax.random.normal(kb1, (C,), jnp.float32)          # norm_1 beta
    g2 = 1.0 + 0.1 * jax.random.normal(kg2, (C,), jnp.float32)    # norm_2 gamma
    b2 = 0.1 * jax.random.normal(kb2, (C,), jnp.float32)          # norm_2 beta

    out = standard_block_pallas(x, w1, w2, g1, b1, g2, b2)
    out = jax.block_until_ready(out)

    ref = standard_block_ref(x, w1, w2, g1, b1, g2, b2)
    assert out.shape == ref.shape == (N, C, H, W)
    assert jnp.allclose(out, ref, atol=1e-4, rtol=1e-4), \
        f"max abs err = {jnp.max(jnp.abs(out - ref))}"

    print("KERNEL_OK")
</pallas_src>

<mosaic_0001>
module attributes {stable_mosaic.version = 11 : i64} {
  func.func @_standard_block_kernel(%arg0: memref<8x512xf32, #tpu.memory_space<vmem>>, %arg1: memref<9x512xf32, #tpu.memory_space<vmem>>, %arg2: memref<8x72xf32, #tpu.memory_space<vmem>>, %arg3: memref<8x72xf32, #tpu.memory_space<vmem>>, %arg4: memref<8x1xf32, #tpu.memory_space<vmem>>, %arg5: memref<8x1xf32, #tpu.memory_space<vmem>>, %arg6: memref<8x1xf32, #tpu.memory_space<vmem>>, %arg7: memref<8x1xf32, #tpu.memory_space<vmem>>, %arg8: memref<8x512xf32, #tpu.memory_space<vmem>>) attributes {dimension_semantics = [], scalar_prefetch = 0 : i64, scratch_operands = 0 : i64, tpu.core_type = #tpu.core_type<tc>} {
    %c0 = arith.constant 0 : index
    %c0_0 = arith.constant 0 : index
    %0 = vector.load %arg0[%c0, %c0_0] : memref<8x512xf32, #tpu.memory_space<vmem>>, vector<8x512xf32>
    %c0_1 = arith.constant 0 : index
    %c0_2 = arith.constant 0 : index
    %1 = vector.load %arg1[%c0_1, %c0_2] : memref<9x512xf32, #tpu.memory_space<vmem>>, vector<9x512xf32>
    %c17_i32 = arith.constant 17 : i32
    %2 = tpu.dynamic_rotate %0 by %c17_i32 dim 1 : vector<8x512xf32>, i32 -> vector<8x512xf32>
    %3 = vector.extract_strided_slice %1 {offsets = [0, 0], sizes = [1, 512], strides = [1, 1]} : vector<9x512xf32> to vector<1x512xf32>
    %4 = vector.broadcast %3 : vector<1x512xf32> to vector<8x512xf32>
    %5 = arith.mulf %2, %4 : vector<8x512xf32>
    %c16_i32 = arith.constant 16 : i32
    %6 = tpu.dynamic_rotate %0 by %c16_i32 dim 1 : vector<8x512xf32>, i32 -> vector<8x512xf32>
    %7 = vector.extract_strided_slice %1 {offsets = [1, 0], sizes = [1, 512], strides = [1, 1]} : vector<9x512xf32> to vector<1x512xf32>
    %8 = vector.broadcast %7 : vector<1x512xf32> to vector<8x512xf32>
    %9 = arith.mulf %6, %8 : vector<8x512xf32>
    %c15_i32 = arith.constant 15 : i32
    %10 = tpu.dynamic_rotate %0 by %c15_i32 dim 1 : vector<8x512xf32>, i32 -> vector<8x512xf32>
    %11 = vector.extract_strided_slice %1 {offsets = [2, 0], sizes = [1, 512], strides = [1, 1]} : vector<9x512xf32> to vector<1x512xf32>
    %12 = vector.broadcast %11 : vector<1x512xf32> to vector<8x512xf32>
    %13 = arith.mulf %10, %12 : vector<8x512xf32>
    %c1_i32 = arith.constant 1 : i32
    %14 = tpu.dynamic_rotate %0 by %c1_i32 dim 1 : vector<8x512xf32>, i32 -> vector<8x512xf32>
    %15 = vector.extract_strided_slice %1 {offsets = [3, 0], sizes = [1, 512], strides = [1, 1]} : vector<9x512xf32> to vector<1x512xf32>
    %16 = vector.broadcast %15 : vector<1x512xf32> to vector<8x512xf32>
    %17 = arith.mulf %14, %16 : vector<8x512xf32>
    %c511_i32 = arith.constant 511 : i32
    %18 = tpu.dynamic_rotate %0 by %c511_i32 dim 1 : vector<8x512xf32>, i32 -> vector<8x512xf32>
    %19 = vector.extract_strided_slice %1 {offsets = [5, 0], sizes = [1, 512], strides = [1, 1]} : vector<9x512xf32> to vector<1x512xf32>
    %20 = vector.broadcast %19 : vector<1x512xf32> to vector<8x512xf32>
    %21 = arith.mulf %18, %20 : vector<8x512xf32>
    %c497_i32 = arith.constant 497 : i32
    %22 = tpu.dynamic_rotate %0 by %c497_i32 dim 1 : vector<8x512xf32>, i32 -> vector<8x512xf32>
    %23 = vector.extract_strided_slice %1 {offsets = [6, 0], sizes = [1, 512], strides = [1, 1]} : vector<9x512xf32> to vector<1x512xf32>
    %24 = vector.broadcast %23 : vector<1x512xf32> to vector<8x512xf32>
    %25 = arith.mulf %22, %24 : vector<8x512xf32>
    %c496_i32 = arith.constant 496 : i32
    %26 = tpu.dynamic_rotate %0 by %c496_i32 dim 1 : vector<8x512xf32>, i32 -> vector<8x512xf32>
    %27 = vector.extract_strided_slice %1 {offsets = [7, 0], sizes = [1, 512], strides = [1, 1]} : vector<9x512xf32> to vector<1x512xf32>
    %28 = vector.broadcast %27 : vector<1x512xf32> to vector<8x512xf32>
    %29 = arith.mulf %26, %28 : vector<8x512xf32>
    %c495_i32 = arith.constant 495 : i32
    %30 = tpu.dynamic_rotate %0 by %c495_i32 dim 1 : vector<8x512xf32>, i32 -> vector<8x512xf32>
    %31 = vector.extract_strided_slice %1 {offsets = [8, 0], sizes = [1, 512], strides = [1, 1]} : vector<9x512xf32> to vector<1x512xf32>
    %32 = vector.broadcast %31 : vector<1x512xf32> to vector<8x512xf32>
    %33 = arith.mulf %30, %32 : vector<8x512xf32>
    %34 = tpu.concatenate %5, %9, %13, %17, %0, %21, %25, %29, %33 in 0 : vector<8x512xf32>, vector<8x512xf32>, vector<8x512xf32>, vector<8x512xf32>, vector<8x512xf32>, vector<8x512xf32>, vector<8x512xf32>, vector<8x512xf32>, vector<8x512xf32> -> vector<72x512xf32>
    %c0_3 = arith.constant 0 : index
    %c0_4 = arith.constant 0 : index
    %35 = vector.load %arg2[%c0_3, %c0_4] : memref<8x72xf32, #tpu.memory_space<vmem>>, vector<8x72xf32>
    %cst = arith.constant dense<0.000000e+00> : vector<8x512xf32>
    %36 = tpu.matmul %35, %34, %cst {dimension_numbers = #tpu.dot_dimension_numbers<[1], [0], [0], [1], [0, 0, 1, 1], [], []>} : vector<8x72xf32>, vector<72x512xf32>, vector<8x512xf32> -> vector<8x512xf32>
    %c0_5 = arith.constant 0 : index
    %c0_6 = arith.constant 0 : index
    %37 = vector.load %arg4[%c0_5, %c0_6] : memref<8x1xf32, #tpu.memory_space<vmem>>, vector<8x1xf32>
    %c0_7 = arith.constant 0 : index
    %c0_8 = arith.constant 0 : index
    %38 = vector.load %arg5[%c0_7, %c0_8] : memref<8x1xf32, #tpu.memory_space<vmem>>, vector<8x1xf32>
    %cst_9 = arith.constant dense<0.000000e+00> : vector<8xf32>
    %39 = vector.multi_reduction <add>, %36, %cst_9 [1] : vector<8x512xf32> to vector<8xf32>
    %40 = vector.shape_cast %39 : vector<8xf32> to vector<8x1xf32>
    %cst_10 = arith.constant 0.001953125 : f32
    %41 = vector.broadcast %cst_10 : f32 to vector<8x1xf32>
    %42 = arith.mulf %40, %41 : vector<8x1xf32>
    %43 = arith.mulf %36, %36 : vector<8x512xf32>
    %cst_11 = arith.constant dense<0.000000e+00> : vector<8xf32>
    %44 = vector.multi_reduction <add>, %43, %cst_11 [1] : vector<8x512xf32> to vector<8xf32>
    %45 = vector.shape_cast %44 : vector<8xf32> to vector<8x1xf32>
    %cst_12 = arith.constant 0.001953125 : f32
    %46 = vector.broadcast %cst_12 : f32 to vector<8x1xf32>
    %47 = arith.mulf %45, %46 : vector<8x1xf32>
    %48 = arith.mulf %42, %42 : vector<8x1xf32>
    %49 = arith.subf %47, %48 : vector<8x1xf32>
    %cst_13 = arith.constant 0.000000e+00 : f32
    %50 = vector.broadcast %cst_13 : f32 to vector<8x1xf32>
    %51 = arith.maximumf %49, %50 : vector<8x1xf32>
    %cst_14 = arith.constant 9.99999974E-6 : f32
    %52 = vector.broadcast %cst_14 : f32 to vector<8x1xf32>
    %53 = arith.addf %51, %52 : vector<8x1xf32>
    %54 = math.rsqrt %53 : vector<8x1xf32>
    %55 = arith.mulf %37, %54 : vector<8x1xf32>
    %56 = arith.mulf %42, %55 : vector<8x1xf32>
    %57 = arith.subf %38, %56 : vector<8x1xf32>
    %58 = vector.broadcast %55 : vector<8x1xf32> to vector<8x512xf32>
    %59 = arith.mulf %36, %58 : vector<8x512xf32>
    %60 = vector.broadcast %57 : vector<8x1xf32> to vector<8x512xf32>
    %61 = arith.addf %59, %60 : vector<8x512xf32>
    %cst_15 = arith.constant 0.000000e+00 : f32
    %62 = vector.broadcast %cst_15 : f32 to vector<8x512xf32>
    %63 = arith.maximumf %61, %62 : vector<8x512xf32>
    %c17_i32_16 = arith.constant 17 : i32
    %64 = tpu.dynamic_rotate %63 by %c17_i32_16 dim 1 : vector<8x512xf32>, i32 -> vector<8x512xf32>
    %65 = vector.extract_strided_slice %1 {offsets = [0, 0], sizes = [1, 512], strides = [1, 1]} : vector<9x512xf32> to vector<1x512xf32>
    %66 = vector.broadcast %65 : vector<1x512xf32> to vector<8x512xf32>
    %67 = arith.mulf %64, %66 : vector<8x512xf32>
    %c16_i32_17 = arith.constant 16 : i32
    %68 = tpu.dynamic_rotate %63 by %c16_i32_17 dim 1 : vector<8x512xf32>, i32 -> vector<8x512xf32>
    %69 = vector.extract_strided_slice %1 {offsets = [1, 0], sizes = [1, 512], strides = [1, 1]} : vector<9x512xf32> to vector<1x512xf32>
    %70 = vector.broadcast %69 : vector<1x512xf32> to vector<8x512xf32>
    %71 = arith.mulf %68, %70 : vector<8x512xf32>
    %c15_i32_18 = arith.constant 15 : i32
    %72 = tpu.dynamic_rotate %63 by %c15_i32_18 dim 1 : vector<8x512xf32>, i32 -> vector<8x512xf32>
    %73 = vector.extract_strided_slice %1 {offsets = [2, 0], sizes = [1, 512], strides = [1, 1]} : vector<9x512xf32> to vector<1x512xf32>
    %74 = vector.broadcast %73 : vector<1x512xf32> to vector<8x512xf32>
    %75 = arith.mulf %72, %74 : vector<8x512xf32>
    %c1_i32_19 = arith.constant 1 : i32
    %76 = tpu.dynamic_rotate %63 by %c1_i32_19 dim 1 : vector<8x512xf32>, i32 -> vector<8x512xf32>
    %77 = vector.extract_strided_slice %1 {offsets = [3, 0], sizes = [1, 512], strides = [1, 1]} : vector<9x512xf32> to vector<1x512xf32>
    %78 = vector.broadcast %77 : vector<1x512xf32> to vector<8x512xf32>
    %79 = arith.mulf %76, %78 : vector<8x512xf32>
    %c511_i32_20 = arith.constant 511 : i32
    %80 = tpu.dynamic_rotate %63 by %c511_i32_20 dim 1 : vector<8x512xf32>, i32 -> vector<8x512xf32>
    %81 = vector.extract_strided_slice %1 {offsets = [5, 0], sizes = [1, 512], strides = [1, 1]} : vector<9x512xf32> to vector<1x512xf32>
    %82 = vector.broadcast %81 : vector<1x512xf32> to vector<8x512xf32>
    %83 = arith.mulf %80, %82 : vector<8x512xf32>
    %c497_i32_21 = arith.constant 497 : i32
    %84 = tpu.dynamic_rotate %63 by %c497_i32_21 dim 1 : vector<8x512xf32>, i32 -> vector<8x512xf32>
    %85 = vector.extract_strided_slice %1 {offsets = [6, 0], sizes = [1, 512], strides = [1, 1]} : vector<9x512xf32> to vector<1x512xf32>
    %86 = vector.broadcast %85 : vector<1x512xf32> to vector<8x512xf32>
    %87 = arith.mulf %84, %86 : vector<8x512xf32>
    %c496_i32_22 = arith.constant 496 : i32
    %88 = tpu.dynamic_rotate %63 by %c496_i32_22 dim 1 : vector<8x512xf32>, i32 -> vector<8x512xf32>
    %89 = vector.extract_strided_slice %1 {offsets = [7, 0], sizes = [1, 512], strides = [1, 1]} : vector<9x512xf32> to vector<1x512xf32>
    %90 = vector.broadcast %89 : vector<1x512xf32> to vector<8x512xf32>
    %91 = arith.mulf %88, %90 : vector<8x512xf32>
    %c495_i32_23 = arith.constant 495 : i32
    %92 = tpu.dynamic_rotate %63 by %c495_i32_23 dim 1 : vector<8x512xf32>, i32 -> vector<8x512xf32>
    %93 = vector.extract_strided_slice %1 {offsets = [8, 0], sizes = [1, 512], strides = [1, 1]} : vector<9x512xf32> to vector<1x512xf32>
    %94 = vector.broadcast %93 : vector<1x512xf32> to vector<8x512xf32>
    %95 = arith.mulf %92, %94 : vector<8x512xf32>
    %96 = tpu.concatenate %67, %71, %75, %79, %63, %83, %87, %91, %95 in 0 : vector<8x512xf32>, vector<8x512xf32>, vector<8x512xf32>, vector<8x512xf32>, vector<8x512xf32>, vector<8x512xf32>, vector<8x512xf32>, vector<8x512xf32>, vector<8x512xf32> -> vector<72x512xf32>
    %c0_24 = arith.constant 0 : index
    %c0_25 = arith.constant 0 : index
    %97 = vector.load %arg3[%c0_24, %c0_25] : memref<8x72xf32, #tpu.memory_space<vmem>>, vector<8x72xf32>
    %cst_26 = arith.constant dense<0.000000e+00> : vector<8x512xf32>
    %98 = tpu.matmul %97, %96, %cst_26 {dimension_numbers = #tpu.dot_dimension_numbers<[1], [0], [0], [1], [0, 0, 1, 1], [], []>} : vector<8x72xf32>, vector<72x512xf32>, vector<8x512xf32> -> vector<8x512xf32>
    %c0_27 = arith.constant 0 : index
    %c0_28 = arith.constant 0 : index
    %99 = vector.load %arg6[%c0_27, %c0_28] : memref<8x1xf32, #tpu.memory_space<vmem>>, vector<8x1xf32>
    %c0_29 = arith.constant 0 : index
    %c0_30 = arith.constant 0 : index
    %100 = vector.load %arg7[%c0_29, %c0_30] : memref<8x1xf32, #tpu.memory_space<vmem>>, vector<8x1xf32>
    %cst_31 = arith.constant dense<0.000000e+00> : vector<8xf32>
    %101 = vector.multi_reduction <add>, %98, %cst_31 [1] : vector<8x512xf32> to vector<8xf32>
    %102 = vector.shape_cast %101 : vector<8xf32> to vector<8x1xf32>
    %cst_32 = arith.constant 0.001953125 : f32
    %103 = vector.broadcast %cst_32 : f32 to vector<8x1xf32>
    %104 = arith.mulf %102, %103 : vector<8x1xf32>
    %105 = arith.mulf %98, %98 : vector<8x512xf32>
    %cst_33 = arith.constant dense<0.000000e+00> : vector<8xf32>
    %106 = vector.multi_reduction <add>, %105, %cst_33 [1] : vector<8x512xf32> to vector<8xf32>
    %107 = vector.shape_cast %106 : vector<8xf32> to vector<8x1xf32>
    %cst_34 = arith.constant 0.001953125 : f32
    %108 = vector.broadcast %cst_34 : f32 to vector<8x1xf32>
    %109 = arith.mulf %107, %108 : vector<8x1xf32>
    %110 = arith.mulf %104, %104 : vector<8x1xf32>
    %111 = arith.subf %109, %110 : vector<8x1xf32>
    %cst_35 = arith.constant 0.000000e+00 : f32
    %112 = vector.broadcast %cst_35 : f32 to vector<8x1xf32>
    %113 = arith.maximumf %111, %112 : vector<8x1xf32>
    %cst_36 = arith.constant 9.99999974E-6 : f32
    %114 = vector.broadcast %cst_36 : f32 to vector<8x1xf32>
    %115 = arith.addf %113, %114 : vector<8x1xf32>
    %116 = math.rsqrt %115 : vector<8x1xf32>
    %117 = arith.mulf %99, %116 : vector<8x1xf32>
    %118 = arith.mulf %104, %117 : vector<8x1xf32>
    %119 = arith.subf %100, %118 : vector<8x1xf32>
    %120 = vector.broadcast %117 : vector<8x1xf32> to vector<8x512xf32>
    %121 = arith.mulf %98, %120 : vector<8x512xf32>
    %122 = vector.broadcast %119 : vector<8x1xf32> to vector<8x512xf32>
    %123 = arith.addf %121, %122 : vector<8x512xf32>
    %124 = arith.addf %123, %0 : vector<8x512xf32>
    %cst_37 = arith.constant 0.000000e+00 : f32
    %125 = vector.broadcast %cst_37 : f32 to vector<8x512xf32>
    %126 = arith.maximumf %124, %125 : vector<8x512xf32>
    %c0_38 = arith.constant 0 : index
    %c0_39 = arith.constant 0 : index
    %127 = vector.load %arg8[%c0_38, %c0_39] : memref<8x512xf32, #tpu.memory_space<vmem>>, vector<8x512xf32>
    tpu.vector_store %arg8[%c0_38, %c0_39], %126 {strides = array<i32>} : memref<8x512xf32, #tpu.memory_space<vmem>>, vector<8x512xf32>,
    return
  }
}

</mosaic_0001>

<bundles_post_ra>
// kernel: standard_block_pallas.1
= control target key start
LH: loop header
LB: loop body
LE: loop exit
PB: predicated region body
PF: predicated region fallthrough
CT: control target
= control target key end

     0   :  { %s860_s9 = smov 111   ;;  %s861_s12 = smov 112   ;;  %v867_v4 = vmov 0.0   ;;  %v49_v5 = vlaneseq  ;;  %vm308_vm8 = vcmask 588800   ;;  %s1456_s0 = inlined_call_operand.vmem [shape: f32[8,512], index: 0, kind: input, shape index: {}]   ;;  %s1457_s1 = inlined_call_operand.vmem [shape: f32[9,512], index: 1, kind: input, shape index: {}]   ;;  %s1458_s2 = inlined_call_operand.vmem [shape: f32[8,72], index: 2, kind: input, shape index: {}]   ;;  %s1459_s4 = inlined_call_operand.vmem [shape: f32[8,1], index: 4, kind: input, shape index: {}]   ;;  %s1460_s5 = inlined_call_operand.vmem [shape: f32[8,1], index: 5, kind: input, shape index: {}]   ;;  %s1461_s3 = inlined_call_operand.vmem [shape: f32[8,72], index: 3, kind: input, shape index: {}]   ;;  %s1462_s6 = inlined_call_operand.vmem [shape: f32[8,1], index: 6, kind: input, shape index: {}]   ;;  %s1463_s7 = inlined_call_operand.vmem [shape: f32[8,1], index: 7, kind: input, shape index: {}]   ;;  %s1464_s8 = inlined_call_operand.vmem [shape: f32[8,512], index: 8, kind: output, shape index: {}]  }
   0x1   :  { %v918_v0 = vld [vmem:[%s1456_s0 + $0x8] sm:$0xff]  ;;  %v923_v1 = vld [vmem:[%s1456_s0] sm:$0xff]  ;;  %v932_v2 = vld [vmem:[%s1456_s0 + $0x10] sm:$0xff]  ;;  %s862_s13 = smov 113   ;;  %s863_s16 = smov 127   ;;  %376 = vmatprep.mubr.f32.mxu0 %v867_v4  ;;  %447 = vmatprep.mubr.f32.mxu1 %v867_v4 }
   0x2   :  { %276 = vrot.lane.b32.xlu0 %v918_v0, %s860_s9  ;;  %274 = vrot.lane.b32.xlu1 %v923_v1, %s860_s9  ;;  %v949_v3 = vld [vmem:[%s1456_s0 + $0x18] sm:$0xff]  ;;  %s864_s0 = smov 1   ;;  %s865_s17 = smov 15   ;;  %v1001_v6 = vand.u32 127, %v49_v5  ;;  %v1003_v7 = vshrl.u32 %v49_v5, 7  ;;  %v1015_v12 = vld [vmem:[%s1457_s1 + $0x8] sm:$0xff] }
   0x3   :  { %s866_s18 = smov 16   ;;  %s868_s19 = smov 17   ;;  %v1010_v11 = vld [vmem:[%s1457_s1 + $0x28] ss:$0 sm:$0xff]  ;;  %v1020_v13 = vld [vmem:[%s1457_s1] sm:$0xff]  ;;  %v1084_v48 = vld [vmem:[%s1457_s1 + $0x10] sm:$0xff] }
   0x4   :  { %vm282_vm0 = vcmp.lt.s32.totalorder %v1001_v6, 111  ;;  %v256_v10 = vsub.s32 7, %v1003_v7  ;;  %v1027_v17 = vld [vmem:[%s1457_s1 + $0x20] ss:$0 sm:$0xff]  ;;  %vm249_vm1 = vcmp.lt.s32.totalorder %v1001_v6, 112  ;;  %v223_v22 = vsub.s32 6, %v1003_v7 }
   0x5   :  { %vm216_vm2 = vcmp.lt.s32.totalorder %v1001_v6, 113  ;;  %v190_v36 = vsub.s32 5, %v1003_v7  ;;  %v1061_v37 = vld [vmem:[%s1457_s1 + $0x38] ss:$0 sm:$0xff]  ;;  %v1066_v38 = vld [vmem:[%s1457_s1 + $0x30] ss:$0 sm:$0xff] }
   0x6   :  { %278 = vrot.lane.b32.xlu0 %v932_v2, %s860_s9  ;;  %243 = vrot.lane.b32.xlu1 %v918_v0, %s861_s12  ;;  %v1034_v20 = vrot.slane %v1015_v12, %v256_v10  ;;  %v1037_v21 = vrot.slane %v1020_v13, %v256_v10  ;;  %v1049_v30 = vrot.slane %v1015_v12, %v223_v22  ;;  %vm183_vm3 = vcmp.lt.s32.totalorder %v1001_v6, 127  ;;  %v1089_v49 = vld [vmem:[%s1457_s1 + $0x18] sm:$0xff] }
   0x7   :  { %v1055_v35 = vrot.slane %v1020_v13, %v223_v22  ;;  %v1078_v46 = vrot.slane %v1015_v12, %v190_v36  ;;  %v1095_v54 = vrot.slane %v1084_v48, %v256_v10  ;;  %v1098_v55 = vrot.slane %v1089_v49, %v256_v10 }
   0x8   :  { %v1101_v56 = vrot.slane %v1020_v13, %v190_v36  ;;  %v1104_v59 = vrot.slane %v1084_v48, %v223_v22  ;;  %v157_v63 = vsub.s32 3, %v1003_v7  ;;  %v1117_v10 = vrot.slane %v1089_v49, %v223_v22 }
   0x9   :  { %vm150_vm4 = vcmp.lt.s32.totalorder %v1001_v6, 1  ;;  %vm117_vm5 = vcmp.lt.s32.totalorder %v1001_v6, 15  ;;  %vm84_vm6 = vcmp.lt.s32.totalorder %v1001_v6, 16  ;;  %vm51_vm7 = vcmp.lt.s32.totalorder %v1001_v6, 17 }
   0xa   :  { %245 = vrot.lane.b32.xlu0 %v932_v2, %s861_s12  ;;  %241 = vrot.lane.b32.xlu1 %v923_v1, %s861_s12 }
   0xe   :  { %210 = vrot.lane.b32.xlu0 %v918_v0, %s862_s13  ;;  %212 = vrot.lane.b32.xlu1 %v932_v2, %s862_s13 }
  0x12   :  { %280 = vrot.lane.b32.xlu0 %v949_v3, %s860_s9  ;;  %208 = vrot.lane.b32.xlu1 %v923_v1, %s862_s13 }
  0x16   :  { %177 = vrot.lane.b32.xlu0 %v918_v0, %s863_s16  ;;  %179 = vrot.lane.b32.xlu1 %v932_v2, %s863_s16 }
  0x1a   :  { %247 = vrot.lane.b32.xlu0 %v949_v3, %s861_s12  ;;  %175 = vrot.lane.b32.xlu1 %v923_v1, %s863_s16 }
  0x1e   :  { %214 = vrot.lane.b32.xlu0 %v949_v3, %s862_s13  ;;  %142 = vrot.lane.b32.xlu1 %v923_v1, %s864_s0 }
  0x22   :  { %144 = vrot.lane.b32.xlu0 %v918_v0, %s864_s0  ;;  %181 = vrot.lane.b32.xlu1 %v949_v3, %s863_s16 }
  0x26   :  { %148 = vrot.lane.b32.xlu0 %v949_v3, %s864_s0  ;;  %109 = vrot.lane.b32.xlu1 %v923_v1, %s865_s17 }
  0x2a   :  { %111 = vrot.lane.b32.xlu0 %v918_v0, %s865_s17  ;;  %115 = vrot.lane.b32.xlu1 %v949_v3, %s865_s17 }
  0x2e   :  { %76 = vrot.lane.b32.xlu0 %v923_v1, %s866_s18  ;;  %78 = vrot.lane.b32.xlu1 %v918_v0, %s866_s18 }
  0x32   :  { %146 = vrot.lane.b32.xlu0 %v932_v2, %s864_s0  ;;  %82 = vrot.lane.b32.xlu1 %v949_v3, %s866_s18 }
  0x36   :  { %41 = vrot.lane.b32.xlu0 %v923_v1, %s868_s19  ;;  %43 = vrot.lane.b32.xlu1 %v918_v0, %s868_s19 }
  0x3a   :  { %113 = vrot.lane.b32.xlu0 %v932_v2, %s865_s17  ;;  %47 = vrot.lane.b32.xlu1 %v949_v3, %s868_s19 }
  0x3e   :  { %80 = vrot.lane.b32.xlu0 %v932_v2, %s866_s18  ;;  %45 = vrot.lane.b32.xlu1 %v932_v2, %s868_s19 }
  0x74   :  { %v277_v8 = vpop.permute.xlu0 %276  ;;  %v275_v9 = vpop.permute.xlu1 %274 }
  0x75   :  { %v285_v14 = vsel %vm282_vm0, %v275_v9, %v277_v8 }
  0x76   :  { %v303_v23 = vmul.f32 %v1027_v17, %v285_v14 }
  0x78   :  { %v279_v15 = vpop.permute.xlu0 %278  ;;  %v244_v16 = vpop.permute.xlu1 %243 }
  0x79   :  { %v284_v18 = vsel %vm282_vm0, %v277_v8, %v279_v15 }
  0x7a   :  { %v304_v19 = vmul.f32 %v1010_v11, %v284_v18 }
  0x7c   :  { %326 = vmatprep.subr.mxu0 %v304_v19  ;;  %v246_v24 = vpop.permute.xlu0 %245  ;;  %v242_v25 = vpop.permute.xlu1 %241  ;;  %v1125_v19 = vrot.slane %v1015_v12, %v157_v63 }
  0x7d   :  { %v251_v26 = vsel %vm249_vm1, %v244_v16, %v246_v24  ;;  %v252_v27 = vsel %vm249_vm1, %v242_v25, %v244_v16  ;;  %327 = vmatpush1.msra.mxu0 %v303_v23 }
  0x7e   :  { %v271_v28 = vmul.f32 %v1034_v20, %v251_v26  ;;  %v270_v29 = vmul.f32 %v1037_v21, %v252_v27 }
  0x80   :  { %v211_v31 = vpop.permute.xlu0 %210  ;;  %328 = vmatprep.subr.mxu0 %v271_v28  ;;  %v213_v32 = vpop.permute.xlu1 %212 }
  0x81   :  { %v218_v33 = vsel %vm216_vm2, %v211_v31, %v213_v32  ;;  %329 = vmatpush1.msra.mxu0 %v270_v29 }
  0x82   :  { %v238_v34 = vmul.f32 %v1049_v30, %v218_v33 }
  0x84   :  { %v281_v39 = vpop.permute.xlu0 %280  ;;  %330 = vmatprep.subr.mxu0 %v238_v34  ;;  %v209_v40 = vpop.permute.xlu1 %208 }
  0x85   :  { %v283_v41 = vsel %vm282_vm0, %v279_v15, %v281_v39  ;;  %v219_v42 = vsel %vm216_vm2, %v209_v40, %v211_v31  ;;  %v286_v43 = vsel %vm282_vm0, %v281_v39, %v275_v9  ;;  %v124_v39 = vsub.s32 2, %v1003_v7 }
  0x86   :  { %v237_v44 = vmul.f32 %v1055_v35, %v219_v42  ;;  %v306_v45 = vmul.f32 %v1061_v37, %v286_v43  ;;  %v305_v47 = vmul.f32 %v1066_v38, %v283_v41 }
  0x88   :  { %v178_v50 = vpop.permute.xlu0 %177  ;;  %331 = vmatpush1.msra.mxu0 %v237_v44  ;;  %397 = vmatprep.subr.mxu1 %v306_v45  ;;  %v180_v51 = vpop.permute.xlu1 %179  ;;  %v1155_v44 = vrot.slane %v1015_v12, %v124_v39  ;;  %v1158_v45 = vrot.slane %v1020_v13, %v124_v39 }
  0x89   :  { %v185_v52 = vsel %vm183_vm3, %v178_v50, %v180_v51  ;;  %398 = vmatpush1.msra.mxu1 %v305_v47  ;;  %v91_v47 = vsub.s32 1, %v1003_v7 }
  0x8a   :  { %v205_v53 = vmul.f32 %v1078_v46, %v185_v52 }
  0x8c   :  { %v248_v57 = vpop.permute.xlu0 %247  ;;  %332 = vmatprep.subr.mxu0 %v205_v53  ;;  %v176_v58 = vpop.permute.xlu1 %175 }
  0x8d   :  { %v250_v60 = vsel %vm249_vm1, %v246_v24, %v248_v57  ;;  %v253_v61 = vsel %vm249_vm1, %v248_v57, %v242_v25  ;;  %v186_v62 = vsel %vm183_vm3, %v176_v58, %v178_v50  ;;  %v1131_v24 = vrot.slane %v1084_v48, %v190_v36 }
  0x8e   :  { %v272_v5 = vmul.f32 %v1095_v54, %v250_v60  ;;  %v273_v8 = vmul.f32 %v1098_v55, %v253_v61  ;;  %v204_v9 = vmul.f32 %v1101_v56, %v186_v62  ;;  %v1134_v25 = vrot.slane %v1089_v49, %v190_v36 }
  0x8f   :  { %v1171_v60 = vrot.slane %v1015_v12, %v91_v47 }
  0x90   :  { %v215_v14 = vpop.permute.xlu0 %214  ;;  %333 = vmatpush1.msra.mxu0 %v204_v9  ;;  %399 = vmatprep.subr.mxu1 %v273_v8  ;;  %v143_v15 = vpop.permute.xlu1 %142  ;;  %v1176_v8 = vrot.slane %v1084_v48, %v157_v63 }
  0x91   :  { %v217_v16 = vsel %vm216_vm2, %v213_v32, %v215_v14  ;;  %v220_v18 = vsel %vm216_vm2, %v215_v14, %v209_v40  ;;  %400 = vmatpush1.msra.mxu1 %v272_v5  ;;  %334 = vmatprep.subr.mxu0 %v918_v0  ;;  %v1144_v32 = vrot.slane %v1020_v13, %v157_v63 }
  0x92   :  { %v239_v22 = vmul.f32 %v1104_v59, %v217_v16  ;;  %v240_v23 = vmul.f32 %v1117_v10, %v220_v18  ;;  %335 = vmatpush1.msra.mxu0 %v923_v1  ;;  %v1180_v14 = vrot.slane %v1089_v49, %v157_v63  ;;  %v58_v16 = vsub.s32 0, %v1003_v7 }
  0x94   :  { %v145_v26 = vpop.permute.xlu0 %144  ;;  %401 = vmatprep.subr.mxu1 %v240_v23  ;;  %v182_v27 = vpop.permute.xlu1 %181 }
  0x95   :  { %v153_v28 = vsel %vm150_vm4, %v143_v15, %v145_v26  ;;  %v184_v29 = vsel %vm183_vm3, %v180_v51, %v182_v27  ;;  %v187_v31 = vsel %vm183_vm3, %v182_v27, %v176_v58  ;;  %402 = vmatpush1.msra.mxu1 %v239_v22 }
  0x96   :  { %v172_v33 = vmul.f32 %v1125_v19, %v153_v28  ;;  %v206_v34 = vmul.f32 %v1131_v24, %v184_v29  ;;  %v207_v36 = vmul.f32 %v1134_v25, %v187_v31  ;;  %v1197_v31 = vrot.slane %v1015_v12, %v58_v16 }
  0x98   :  { %v149_v40 = vpop.permute.xlu0 %148  ;;  %336 = vmatprep.subr.mxu0 %v172_v33  ;;  %403 = vmatprep.subr.mxu1 %v207_v36  ;;  %v110_v41 = vpop.permute.xlu1 %109 }
  0x99   :  { %v154_v42 = vsel %vm150_vm4, %v149_v40, %v143_v15  ;;  %404 = vmatpush1.msra.mxu1 %v206_v34  ;;  %v1183_v15 = vrot.slane %v1020_v13, %v91_v47 }
  0x9a   :  { %v171_v43 = vmul.f32 %v1144_v32, %v154_v42  ;;  %405 = vmatprep.subr.mxu1 %v949_v3  ;;  %v1209_v42 = vrot.slane %v1020_v13, %v58_v16 }
  0x9b   :  { %406 = vmatpush1.msra.mxu1 %v932_v2 }
  0x9c   :  { %v112_v50 = vpop.permute.xlu0 %111  ;;  %337 = vmatpush1.msra.mxu0 %v171_v43  ;;  %v116_v51 = vpop.permute.xlu1 %115 }
  0x9d   :  { %v120_v52 = vsel %vm117_vm5, %v110_v41, %v112_v50  ;;  %v121_v53 = vsel %vm117_vm5, %v116_v51, %v110_v41  ;;  %v1206_v41 = vrot.slane %v1089_v49, %v124_v39 }
  0x9e   :  { %v139_v57 = vmul.f32 %v1155_v44, %v120_v52  ;;  %v138_v58 = vmul.f32 %v1158_v45, %v121_v53 }
  0xa0   :  { %v77_v61 = vpop.permute.xlu0 %76  ;;  %338 = vmatprep.subr.mxu0 %v139_v57  ;;  %v79_v62 = vpop.permute.xlu1 %78 }
  0xa1   :  { %v87_v5 = vsel %vm84_vm6, %v77_v61, %v79_v62  ;;  %339 = vmatpush1.msra.mxu0 %v138_v58  ;;  %v1218_v58 = vrot.slane %v1084_v48, %v91_v47 }
  0xa2   :  { %v106_v9 = vmul.f32 %v1171_v60, %v87_v5  ;;  %v1224_v5 = vrot.slane %v1089_v49, %v91_v47  ;;  %v1237_v47 = vrot.slane %v1084_v48, %v58_v16 }
  0xa4   :  { %v147_v18 = vpop.permute.xlu0 %146  ;;  %340 = vmatprep.subr.mxu0 %v106_v9  ;;  %v83_v22 = vpop.permute.xlu1 %82  ;;  %v1230_v9 = vrot.slane %v1089_v49, %v58_v16 }
  0xa5   :  { %v151_v23 = vsel %vm150_vm4, %v147_v18, %v149_v40  ;;  %v152_v27 = vsel %vm150_vm4, %v145_v26, %v147_v18  ;;  %v88_v28 = vsel %vm84_vm6, %v83_v22, %v77_v61  ;;  %v1203_v40 = vrot.slane %v1084_v48, %v124_v39 }
  0xa6   :  { %v173_v63 = vmul.f32 %v1176_v8, %v152_v27  ;;  %v174_v29 = vmul.f32 %v1180_v14, %v151_v23  ;;  %v105_v7 = vmul.f32 %v1183_v15, %v88_v28 }
  0xa8   :  { %v42_v33 = vpop.permute.xlu0 %41  ;;  %341 = vmatpush1.msra.mxu0 %v105_v7  ;;  %407 = vmatprep.subr.mxu1 %v174_v29  ;;  %v44_v34 = vpop.permute.xlu1 %43 }
  0xa9   :  { %v54_v26 = vsel %vm51_vm7, %v42_v33, %v44_v34  ;;  %408 = vmatpush1.msra.mxu1 %v173_v63 }
  0xaa   :  { %v73_v36 = vmul.f32 %v1197_v31, %v54_v26 }
  0xac   :  { %v114_v12 = vpop.permute.xlu0 %113  ;;  %342 = vmatprep.subr.mxu0 %v73_v36  ;;  %v48_v43 = vpop.permute.xlu1 %47 }
  0xad   :  { %v118_v52 = vsel %vm117_vm5, %v114_v12, %v116_v51  ;;  %v119_v53 = vsel %vm117_vm5, %v112_v50, %v114_v12  ;;  %v55_v57 = vsel %vm51_vm7, %v48_v43, %v42_v33  ;;  %v307_v51 = vld [vmem:[%s1458_s2] sm:$0xff] }
  0xae   :  { %v140_v39 = vmul.f32 %v1203_v40, %v119_v53  ;;  %v141_v13 = vmul.f32 %v1206_v41, %v118_v52  ;;  %v72_v61 = vmul.f32 %v1209_v42, %v55_v57 }
  0xb0   :  { %v81_v50 = vpop.permute.xlu0 %80  ;;  %343 = vmatpush1.msra.mxu0 %v72_v61  ;;  %409 = vmatprep.subr.mxu1 %v141_v13  ;;  %v46_v18 = vpop.permute.xlu1 %45  ;;  %v869_v61 = vmov 0  }
  0xb1   :  { %v85_v23 = vsel %vm84_vm6, %v81_v50, %v83_v22  ;;  %v86_v27 = vsel %vm84_vm6, %v79_v62, %v81_v50  ;;  %v52_v28 = vsel %vm51_vm7, %v46_v18, %v48_v43  ;;  %410 = vmatpush1.msra.mxu1 %v140_v39  ;;  %v53_v49 = vsel %vm51_vm7, %v44_v34, %v46_v18 }
  0xb2   :  { %v107_v63 = vmul.f32 %v1218_v58, %v86_v27  ;;  %v108_v29 = vmul.f32 %v1224_v5, %v85_v23  ;;  %840 = vmatmul.mubr.msk.f32.vlgmr.msra.gmra.mxu0 %vm308_vm8, %v307_v51  ;;  %v75_v62 = vmul.f32 %v1230_v9, %v52_v28  ;;  %v74_v48 = vmul.f32 %v1237_v47, %v53_v49 }
  0xb3   :  { %698 = vmatprep.mubr.f32.mxu0 %v867_v4  ;;  %854 = vset.pattern.permute.xlu0 %v869_v61 }
  0xb4   :  { %411 = vmatprep.subr.mxu1 %v108_v29  ;;  %855 = vset.pattern.permute.xlu1 %v869_v61  ;;  %v454_v29 = vld [vmem:[%s1459_s4] sm:$0xff] }
  0xb5   :  { %412 = vmatpush1.msra.mxu1 %v107_v63 }
  0xb6   :  { %413 = vmatprep.subr.mxu1 %v75_v62 }
  0xb7   :  { %414 = vmatpush1.msra.mxu1 %v74_v48  ;;  %v455_v48 = vld [vmem:[%s1460_s5] sm:$0xff] }
  0xb8   :  { %841 = vmatmul.mubr.msk.f32.vlgmr.msra.gmra.mxu1 %vm308_vm8, %v307_v51 }
  0xb9   :  { %769 = vmatprep.mubr.f32.mxu1 %v867_v4 }
 0x172   :  { %v378_v16 = vpop.f32.mrf.mxu0 }
 0x173   :  { %v462_v7 = vmul.f32 %v378_v16, %v378_v16 }
 0x174   :  { %v380_v22 = vpop.f32.mrf.mxu0 }
 0x175   :  { %v463_v33 = vmul.f32 %v380_v22, %v380_v22  ;;  %v456_v34 = vadd.f32 %v380_v22, %v378_v16 }
 0x177   :  { %v466_v43 = vadd.f32 %v463_v33, %v462_v7 }
 0x178   :  { %v449_v26 = vpop.f32.mrf.mxu1 }
 0x179   :  { %v464_v36 = vmul.f32 %v449_v26, %v449_v26  ;;  %v457_v12 = vadd.f32 %v456_v34, %v449_v26 }
 0x17a   :  { %v451_v52 = vpop.f32.mrf.mxu1 }
 0x17b   :  { %v458_v53 = vadd.f32 %v457_v12, %v451_v52  ;;  %v465_v57 = vmul.f32 %v451_v52, %v451_v52  ;;  %v467_v39 = vadd.f32 %v466_v43, %v464_v36 }
 0x17d   :  { %459 = vadd.xlane.f32.xlu0 %v458_v53  ;;  %v468_v13 = vadd.f32 %v467_v39, %v465_v57 }
 0x17f   :  { %469 = vadd.xlane.f32.xlu1 %v468_v13 }
 0x206   :  { %v460_v4 = vpop.xlane.xlu0 %459 }
 0x207   :  { %v461_v51 = vmul.f32 0.001953125, %v460_v4 }
 0x208   :  { %v470_v50 = vpop.xlane.xlu1 %469 }
 0x209   :  { %v472_v18 = vmul.f32 %v461_v51, %v461_v51  ;;  %v471_v23 = vmul.f32 0.001953125, %v470_v50 }
 0x20b   :  { %v473_v27 = vsub.f32 %v471_v23, %v472_v18 }
 0x20d   :  { %v474_v28 = vmax.f32 %v473_v27, 0.0 }
 0x20f   :  { %v475_v63 = vadd.f32 1e-05, %v474_v28 }
 0x211   :  { %856 = vrsqrt.f32 %v475_v63 }
 0x21e   :  { %v857_v49 = vpop.eup %856 }
 0x21f   :  { %v477_v62 = vmul.f32 %v857_v49, %v454_v29 }
 0x221   :  { %482 = vperm.xlu0 %854, %v477_v62   ;;  %v478_v7 = vmul.f32 %v477_v62, %v461_v51 }
 0x223   :  { %v479_v33 = vsub.f32 %v455_v48, %v478_v7 }
 0x225   :  { %491 = vperm.xlu1 %855, %v479_v33  }
 0x29c   :  { %v483_v34 = vpop.permute.xlu0 %482 }
 0x29d   :  { %v486_v36 = vmul.f32 %v483_v34, %v380_v22  ;;  %v487_v43 = vmul.f32 %v483_v34, %v449_v26  ;;  %v488_v53 = vmul.f32 %v483_v34, %v451_v52  ;;  %v485_v4 = vmul.f32 %v483_v34, %v378_v16 }
 0x2a0   :  { %v492_v12 = vpop.permute.xlu1 %491 }
 0x2a1   :  { %v495_v57 = vadd.f32 %v492_v12, %v486_v36  ;;  %v496_v39 = vadd.f32 %v492_v12, %v487_v43  ;;  %v497_v13 = vadd.f32 %v492_v12, %v488_v53  ;;  %v494_v51 = vadd.f32 %v492_v12, %v485_v4 }
 0x2a3   :  { %v1257_v61 = vmax.f32 %v495_v57, 0.0  ;;  %v1263_v50 = vmax.f32 %v496_v39, 0.0  ;;  %v1265_v18 = vmax.f32 %v497_v13, 0.0  ;;  %v1271_v22 = vmax.f32 %v494_v51, 0.0 }
 0x2a5   :  { %584 = vrot.lane.b32.xlu0 %v1257_v61, %s862_s13  ;;  %616 = vrot.lane.b32.xlu1 %v1257_v61, %s860_s9 }
 0x2a9   :  { %620 = vrot.lane.b32.xlu0 %v1265_v18, %s860_s9  ;;  %618 = vrot.lane.b32.xlu1 %v1263_v50, %s860_s9 }
 0x2ad   :  { %568 = vrot.lane.b32.xlu0 %v1257_v61, %s863_s16  ;;  %614 = vrot.lane.b32.xlu1 %v1271_v22, %s860_s9 }
 0x2b1   :  { %604 = vrot.lane.b32.xlu0 %v1265_v18, %s861_s12  ;;  %600 = vrot.lane.b32.xlu1 %v1257_v61, %s861_s12 }
 0x2b5   :  { %588 = vrot.lane.b32.xlu0 %v1265_v18, %s862_s13  ;;  %602 = vrot.lane.b32.xlu1 %v1263_v50, %s861_s12 }
 0x2b9   :  { %552 = vrot.lane.b32.xlu0 %v1257_v61, %s864_s0  ;;  %598 = vrot.lane.b32.xlu1 %v1271_v22, %s861_s12 }
 0x2bd   :  { %556 = vrot.lane.b32.xlu0 %v1265_v18, %s864_s0  ;;  %586 = vrot.lane.b32.xlu1 %v1263_v50, %s862_s13 }
 0x2c1   :  { %536 = vrot.lane.b32.xlu0 %v1257_v61, %s865_s17  ;;  %582 = vrot.lane.b32.xlu1 %v1271_v22, %s862_s13 }
 0x2c5   :  { %518 = vrot.lane.b32.xlu0 %v1271_v22, %s866_s18  ;;  %570 = vrot.lane.b32.xlu1 %v1263_v50, %s863_s16 }
 0x2c9   :  { %554 = vrot.lane.b32.xlu0 %v1263_v50, %s864_s0  ;;  %566 = vrot.lane.b32.xlu1 %v1271_v22, %s863_s16 }
 0x2cd   :  { %502 = vrot.lane.b32.xlu0 %v1271_v22, %s868_s19  ;;  %550 = vrot.lane.b32.xlu1 %v1271_v22, %s864_s0 }
 0x2d1   :  { %538 = vrot.lane.b32.xlu0 %v1263_v50, %s865_s17  ;;  %572 = vrot.lane.b32.xlu1 %v1265_v18, %s863_s16 }
 0x2d5   :  { %522 = vrot.lane.b32.xlu0 %v1263_v50, %s866_s18  ;;  %534 = vrot.lane.b32.xlu1 %v1271_v22, %s865_s17 }
 0x2d9   :  { %540 = vrot.lane.b32.xlu1 %v1265_v18, %s865_s17 }
 0x2dd   :  { %520 = vrot.lane.b32.xlu1 %v1257_v61, %s866_s18 }
 0x2e1   :  { %524 = vrot.lane.b32.xlu1 %v1265_v18, %s866_s18 }
 0x2e5   :  { %504 = vrot.lane.b32.xlu1 %v1257_v61, %s868_s19 }
 0x2e9   :  { %508 = vrot.lane.b32.xlu1 %v1265_v18, %s868_s19 }
 0x2ed   :  { %506 = vrot.lane.b32.xlu1 %v1263_v50, %s868_s19 }
 0x317   :  { %v585_v16 = vpop.permute.xlu0 %584  ;;  %v617_v26 = vpop.permute.xlu1 %616 }
 0x31b   :  { %v621_v52 = vpop.permute.xlu0 %620  ;;  %v619_v23 = vpop.permute.xlu1 %618 }
 0x31c   :  { %v623_v27 = vsel %vm282_vm0, %v617_v26, %v619_v23  ;;  %v622_v63 = vsel %vm282_vm0, %v619_v23, %v621_v52 }
 0x31d   :  { %v627_v28 = vmul.f32 %v1010_v11, %v623_v27  ;;  %v628_v34 = vmul.f32 %v1066_v38, %v622_v63 }
 0x31f   :  { %v569_v29 = vpop.permute.xlu0 %568  ;;  %648 = vmatprep.subr.mxu0 %v627_v28  ;;  %v615_v49 = vpop.permute.xlu1 %614 }
 0x320   :  { %v624_v62 = vsel %vm282_vm0, %v615_v49, %v617_v26  ;;  %v625_v48 = vsel %vm282_vm0, %v621_v52, %v615_v49 }
 0x321   :  { %v626_v7 = vmul.f32 %v1027_v17, %v624_v62  ;;  %v629_v33 = vmul.f32 %v1061_v37, %v625_v48 }
 0x323   :  { %v605_v36 = vpop.permute.xlu0 %604  ;;  %649 = vmatpush1.msra.mxu0 %v626_v7  ;;  %719 = vmatprep.subr.mxu1 %v629_v33  ;;  %v601_v11 = vpop.permute.xlu1 %600 }
 0x324   :  { %720 = vmatpush1.msra.mxu1 %v628_v34 }
 0x327   :  { %v589_v12 = vpop.permute.xlu0 %588  ;;  %v603_v43 = vpop.permute.xlu1 %602 }
 0x328   :  { %v607_v53 = vsel %vm249_vm1, %v601_v11, %v603_v43  ;;  %v606_v39 = vsel %vm249_vm1, %v603_v43, %v605_v36 }
 0x329   :  { %v611_v57 = vmul.f32 %v607_v53, %v1034_v20  ;;  %v612_v26 = vmul.f32 %v606_v39, %v1095_v54 }
 0x32b   :  { %v553_v17 = vpop.permute.xlu0 %552  ;;  %650 = vmatprep.subr.mxu0 %v611_v57  ;;  %v599_v37 = vpop.permute.xlu1 %598 }
 0x32c   :  { %v608_v38 = vsel %vm249_vm1, %v599_v37, %v601_v11  ;;  %v609_v13 = vsel %vm249_vm1, %v605_v36, %v599_v37 }
 0x32d   :  { %v610_v4 = vmul.f32 %v608_v38, %v1037_v21  ;;  %v613_v51 = vmul.f32 %v609_v13, %v1098_v55 }
 0x32f   :  { %v557_v52 = vpop.permute.xlu0 %556  ;;  %651 = vmatpush1.msra.mxu0 %v610_v4  ;;  %721 = vmatprep.subr.mxu1 %v613_v51  ;;  %v587_v20 = vpop.permute.xlu1 %586 }
 0x330   :  { %v591_v23 = vsel %vm216_vm2, %v585_v16, %v587_v20  ;;  %722 = vmatpush1.msra.mxu1 %v612_v26  ;;  %v590_v28 = vsel %vm216_vm2, %v587_v20, %v589_v12 }
 0x331   :  { %v595_v27 = vmul.f32 %v591_v23, %v1049_v30  ;;  %v596_v48 = vmul.f32 %v590_v28, %v1104_v59 }
 0x333   :  { %v537_v63 = vpop.permute.xlu0 %536  ;;  %652 = vmatprep.subr.mxu0 %v595_v27  ;;  %v583_v21 = vpop.permute.xlu1 %582 }
 0x334   :  { %v592_v55 = vsel %vm216_vm2, %v583_v21, %v585_v16  ;;  %v593_v54 = vsel %vm216_vm2, %v589_v12, %v583_v21 }
 0x335   :  { %v594_v49 = vmul.f32 %v592_v55, %v1055_v35  ;;  %v597_v62 = vmul.f32 %v593_v54, %v1117_v10 }
 0x337   :  { %v519_v7 = vpop.permute.xlu0 %518  ;;  %653 = vmatpush1.msra.mxu0 %v594_v49  ;;  %723 = vmatprep.subr.mxu1 %v597_v62  ;;  %v571_v30 = vpop.permute.xlu1 %570 }
 0x338   :  { %v575_v33 = vsel %vm183_vm3, %v569_v29, %v571_v30  ;;  %724 = vmatpush1.msra.mxu1 %v596_v48 }
 0x339   :  { %v579_v34 = vmul.f32 %v575_v33, %v1078_v46 }
 0x33b   :  { %654 = vmatprep.subr.mxu0 %v579_v34  ;;  %v567_v16 = vpop.permute.xlu1 %566  ;;  %v555_v36 = vpop.permute.xlu0 %554 }
 0x33c   :  { %v576_v35 = vsel %vm183_vm3, %v567_v16, %v569_v29 }
 0x33d   :  { %v578_v10 = vmul.f32 %v576_v35, %v1101_v56 }
 0x33f   :  { %655 = vmatpush1.msra.mxu0 %v578_v10  ;;  %v551_v59 = vpop.permute.xlu1 %550  ;;  %v503_v53 = vpop.permute.xlu0 %502 }
 0x340   :  { %v560_v11 = vsel %vm150_vm4, %v551_v59, %v553_v17  ;;  %v561_v12 = vsel %vm150_vm4, %v557_v52, %v551_v59  ;;  %656 = vmatprep.subr.mxu0 %v1257_v61 }
 0x341   :  { %v562_v46 = vmul.f32 %v561_v12, %v1144_v32  ;;  %v563_v43 = vmul.f32 %v560_v11, %v1125_v19  ;;  %657 = vmatpush1.msra.mxu0 %v1271_v22  ;;  %v558_v32 = vsel %vm150_vm4, %v555_v36, %v557_v52  ;;  %v559_v19 = vsel %vm150_vm4, %v553_v17, %v555_v36 }
 0x342   :  { %v565_v13 = vmul.f32 %v558_v32, %v1180_v14  ;;  %v776_v32 = vld [vmem:[%s1462_s6] sm:$0xff] }
 0x343   :  { %658 = vmatprep.subr.mxu0 %v563_v43  ;;  %v573_v29 = vpop.permute.xlu1 %572  ;;  %v539_v37 = vpop.permute.xlu0 %538 }
 0x344   :  { %v574_v56 = vsel %vm183_vm3, %v571_v30, %v573_v29  ;;  %v577_v57 = vsel %vm183_vm3, %v573_v29, %v567_v16  ;;  %659 = vmatpush1.msra.mxu0 %v562_v46 }
 0x345   :  { %v580_v39 = vmul.f32 %v574_v56, %v1131_v24  ;;  %v581_v61 = vmul.f32 %v577_v57, %v1134_v25  ;;  %v564_v24 = vmul.f32 %v559_v19, %v1176_v8  ;;  %v543_v25 = vsel %vm117_vm5, %v537_v63, %v539_v37 }
 0x346   :  { %v548_v8 = vmul.f32 %v543_v25, %v1203_v40 }
 0x347   :  { %725 = vmatprep.subr.mxu1 %v581_v61  ;;  %v535_v22 = vpop.permute.xlu1 %534  ;;  %v523_v20 = vpop.permute.xlu0 %522 }
 0x348   :  { %v544_v38 = vsel %vm117_vm5, %v535_v22, %v537_v63  ;;  %726 = vmatpush1.msra.mxu1 %v580_v39 }
 0x349   :  { %v547_v4 = vmul.f32 %v544_v38, %v1155_v44  ;;  %727 = vmatprep.subr.mxu1 %v1265_v18 }
 0x34a   :  { %728 = vmatpush1.msra.mxu1 %v1263_v50 }
 0x34b   :  { %660 = vmatprep.subr.mxu0 %v547_v4  ;;  %729 = vmatprep.subr.mxu1 %v565_v13  ;;  %v541_v17 = vpop.permute.xlu1 %540 }
 0x34c   :  { %v542_v51 = vsel %vm117_vm5, %v539_v37, %v541_v17  ;;  %v545_v14 = vsel %vm117_vm5, %v541_v17, %v535_v22  ;;  %730 = vmatpush1.msra.mxu1 %v564_v24  ;;  %v777_v37 = vld [vmem:[%s1463_s7] sm:$0xff] }
 0x34d   :  { %v546_v44 = vmul.f32 %v545_v14, %v1158_v45  ;;  %v549_v18 = vmul.f32 %v542_v51, %v1206_v41 }
 0x34f   :  { %661 = vmatpush1.msra.mxu0 %v546_v44  ;;  %731 = vmatprep.subr.mxu1 %v549_v18  ;;  %v521_v50 = vpop.permute.xlu1 %520 }
 0x350   :  { %v528_v26 = vsel %vm84_vm6, %v519_v7, %v521_v50  ;;  %732 = vmatpush1.msra.mxu1 %v548_v8  ;;  %v527_v23 = vsel %vm84_vm6, %v521_v50, %v523_v20 }
 0x351   :  { %v531_v52 = vmul.f32 %v528_v26, %v1171_v60  ;;  %v532_v63 = vmul.f32 %v527_v23, %v1218_v58  ;;  %v630_v58 = vld [vmem:[%s1461_s3] sm:$0xff] }
 0x353   :  { %662 = vmatprep.subr.mxu0 %v531_v52  ;;  %v525_v27 = vpop.permute.xlu1 %524 }
 0x354   :  { %v526_v45 = vsel %vm84_vm6, %v523_v20, %v525_v27  ;;  %v529_v40 = vsel %vm84_vm6, %v525_v27, %v519_v7 }
 0x355   :  { %v530_v41 = vmul.f32 %v529_v40, %v1183_v15  ;;  %v533_v28 = vmul.f32 %v526_v45, %v1224_v5 }
 0x357   :  { %663 = vmatpush1.msra.mxu0 %v530_v41  ;;  %733 = vmatprep.subr.mxu1 %v533_v28  ;;  %v505_v60 = vpop.permute.xlu1 %504 }
 0x358   :  { %v512_v21 = vsel %vm51_vm7, %v503_v53, %v505_v60  ;;  %734 = vmatpush1.msra.mxu1 %v532_v63 }
 0x359   :  { %v515_v55 = vmul.f32 %v512_v21, %v1197_v31 }
 0x35b   :  { %664 = vmatprep.subr.mxu0 %v515_v55  ;;  %v509_v54 = vpop.permute.xlu1 %508 }
 0x35c   :  { %v513_v49 = vsel %vm51_vm7, %v509_v54, %v503_v53 }
 0x35d   :  { %v514_v15 = vmul.f32 %v513_v49, %v1209_v42 }
 0x35f   :  { %665 = vmatpush1.msra.mxu0 %v514_v15  ;;  %v507_v5 = vpop.permute.xlu1 %506 }
 0x360   :  { %v510_v62 = vsel %vm51_vm7, %v507_v5, %v509_v54  ;;  %v511_v48 = vsel %vm51_vm7, %v505_v60, %v507_v5  ;;  %842 = vmatmul.mubr.msk.f32.vlgmr.msra.gmra.mxu0 %vm308_vm8, %v630_v58 }
 0x361   :  { %v516_v31 = vmul.f32 %v511_v48, %v1237_v47  ;;  %v517_v7 = vmul.f32 %v510_v62, %v1230_v9 }
 0x363   :  { %735 = vmatprep.subr.mxu1 %v517_v7 }
 0x364   :  { %736 = vmatpush1.msra.mxu1 %v516_v31 }
 0x365   :  { %843 = vmatmul.mubr.msk.f32.vlgmr.msra.gmra.mxu1 %vm308_vm8, %v630_v58 }
 0x420   :  { %v700_v42 = vpop.f32.mrf.mxu0 }
 0x421   :  { %v784_v30 = vmul.f32 %v700_v42, %v700_v42 }
 0x422   :  { %v702_v33 = vpop.f32.mrf.mxu0 }
 0x423   :  { %v778_v34 = vadd.f32 %v702_v33, %v700_v42  ;;  %v785_v16 = vmul.f32 %v702_v33, %v702_v33 }
 0x425   :  { %v788_v36 = vadd.f32 %v785_v16, %v784_v30  ;;  %v771_v35 = vpop.f32.mrf.mxu1 }
 0x426   :  { %v786_v10 = vmul.f32 %v771_v35, %v771_v35  ;;  %v779_v6 = vadd.f32 %v778_v34, %v771_v35 }
 0x427   :  { %v773_v59 = vpop.f32.mrf.mxu1 }
 0x428   :  { %v787_v11 = vmul.f32 %v773_v59, %v773_v59  ;;  %v780_v12 = vadd.f32 %v779_v6, %v773_v59  ;;  %v789_v46 = vadd.f32 %v788_v36, %v786_v10 }
 0x42a   :  { %781 = vadd.xlane.f32.xlu0 %v780_v12  ;;  %v790_v47 = vadd.f32 %v789_v46, %v787_v11 }
 0x42c   :  { %791 = vadd.xlane.f32.xlu1 %v790_v47 }
 0x4b3   :  { %v782_v9 = vpop.xlane.xlu0 %781 }
 0x4b4   :  { %v783_v43 = vmul.f32 0.001953125, %v782_v9 }
 0x4b5   :  { %v792_v53 = vpop.xlane.xlu1 %791 }
 0x4b6   :  { %v794_v29 = vmul.f32 %v783_v43, %v783_v43  ;;  %v793_v56 = vmul.f32 0.001953125, %v792_v53 }
 0x4b8   :  { %v795_v57 = vsub.f32 %v793_v56, %v794_v29 }
 0x4ba   :  { %v796_v39 = vmax.f32 %v795_v57, 0.0 }
 0x4bc   :  { %v797_v61 = vadd.f32 1e-05, %v796_v39 }
 0x4be   :  { %858 = vrsqrt.f32 %v797_v61 }
 0x4cb   :  { %v859_v19 = vpop.eup %858 }
 0x4cc   :  { %v799_v22 = vmul.f32 %v859_v19, %v776_v32 }
 0x4ce   :  { %804 = vperm.xlu0 %854, %v799_v22   ;;  %v800_v38 = vmul.f32 %v799_v22, %v783_v43 }
 0x4d0   :  { %v801_v13 = vsub.f32 %v777_v37, %v800_v38 }
 0x4d2   :  { %813 = vperm.xlu1 %855, %v801_v13  }
 0x549   :  { %v805_v4 = vpop.permute.xlu0 %804 }
 0x54a   :  { %v807_v24 = vmul.f32 %v805_v4, %v700_v42  ;;  %v808_v25 = vmul.f32 %v805_v4, %v702_v33  ;;  %v809_v17 = vmul.f32 %v805_v4, %v771_v35  ;;  %v810_v51 = vmul.f32 %v805_v4, %v773_v59 }
 0x54d   :  { %v814_v14 = vpop.permute.xlu1 %813 }
 0x54e   :  { %v816_v44 = vadd.f32 %v814_v14, %v807_v24  ;;  %v817_v18 = vadd.f32 %v814_v14, %v808_v25  ;;  %v818_v8 = vadd.f32 %v814_v14, %v809_v17  ;;  %v819_v50 = vadd.f32 %v814_v14, %v810_v51 }
 0x550   :  { %v820_v26 = vadd.f32 %v816_v44, %v923_v1  ;;  %v821_v52 = vadd.f32 %v817_v18, %v918_v0  ;;  %v822_v20 = vadd.f32 %v818_v8, %v932_v2  ;;  %v823_v23 = vadd.f32 %v819_v50, %v949_v3 }
 0x552   :  { %v824_v27 = vmax.f32 %v820_v26, 0.0  ;;  %v825_v45 = vmax.f32 %v821_v52, 0.0  ;;  %v826_v40 = vmax.f32 %v822_v20, 0.0  ;;  %v827_v41 = vmax.f32 %v823_v23, 0.0 }
 0x554   :  { %828 = vst [vmem:[%s1464_s8] sm:$0xff] %v824_v27  ;;  %829 = vst [vmem:[%s1464_s8 + $0x8] sm:$0xff] %v825_v45 }
 0x555   :  { %830 = vst [vmem:[%s1464_s8 + $0x10] sm:$0xff] %v826_v40  ;;  %831 = vst [vmem:[%s1464_s8 + $0x18] sm:$0xff] %v827_v41 }

</bundles_post_ra>
